<compile_context>
chip_gen: v7x
topology: tpu7x:2x2x1
jax: 0.10.0
libtpu: 0.0.40
codegen_flags: <defaults>
</compile_context>

<pallas_src>
import jax
import jax.numpy as jnp
from jax import lax
from jax.experimental import pallas as pl
from jax.experimental.pallas import tpu as pltpu


def _round_up(v, m):
    return ((v + m - 1) // m) * m


def _round_down(v, m):
    return (v // m) * m


def _mlp_kernel(x_ref, w1_ref, b1_ref, w2_ref, b2_ref, ot_ref):
    """One batch tile: y^T = W2 @ relu(W1 @ x^T + b1) + b2 (lane-dense h^T/y^T)."""
    # h^T = W1 @ x^T : contract the last dims of W1 (cls_f, in_f) and the
    # native-layout x tile (tile_n, in_f).  MXU-native trans-B matmul; result
    # (cls_f, tile_n) is lane-dense.  Accumulate in f32.
    ht = lax.dot_general(
        w1_ref[...], x_ref[...],
        dimension_numbers=(((1,), (1,)), ((), ())),
        preferred_element_type=jnp.float32)                    # (cls_f, tile_n)
    ht = jnp.maximum(ht + b1_ref[...], 0.0)                    # bias bcast + ReLU (VPU)
    # Deliberate precision choice: the 2nd (tiny) matmul runs in the weights'
    # dtype -- a no-op for f32 weights, the single-pass bf16 MXU path if the
    # caller opted into bf16 compute.
    yt = jnp.dot(w2_ref[...], ht.astype(w2_ref.dtype),
                 preferred_element_type=jnp.float32)           # (out_f, tile_n)
    ot_ref[...] = (yt + b2_ref[...]).astype(ot_ref.dtype)


def _select_tile_n(n, tile_n):
    """Pick/validate the batch tile.

    Legality: the tile is the sublane dim of the x block and the lane dim of
    the y^T block, so it must be a multiple of 128 or equal to the full batch.
    """
    if tile_n is not None:                      # explicit override (tests)
        if tile_n >= n or n < 128:
            return n
        return max(128, _round_down(min(tile_n, n), 128))
    # This kernel is per-step-overhead / HBM bound, so favour the fewest,
    # biggest tiles:
    #  * n <= 4096: one grid step.  Splitting is pure serial overhead on 1-TC
    #    v5e/v6e (~0.35 us/step) and gives each v7x core a single un-pipelined
    #    step with a fully exposed DMA prologue.
    #  * large n: tiles up to 8192 lanes, >=4 steps so each v7x TensorCore
    #    (under the "parallel" split) gets >=2 steps to double-buffer.
    if n <= 4096:
        return n
    return max(512, min(8192, _round_down(pl.cdiv(n, 4), 128)))


def _vmem_budget_bytes(in_f, cls_f, out_f, tile_n, itemsize):
    """Explicit scoped-VMEM budget (dims pad to 8 sublanes / 128 lanes)."""
    lanes = lambda d: _round_up(d, 128)
    subs = lambda d: _round_up(d, 8)
    x_buf = subs(tile_n) * lanes(in_f) * itemsize              # native (tile_n, in_f)
    o_buf = subs(out_f) * lanes(tile_n) * itemsize             # y^T (out_f, tile_n)
    h_tmp = subs(cls_f) * lanes(tile_n) * 4                    # f32 hidden tile
    w_bufs = (subs(cls_f) * lanes(in_f) + subs(cls_f) * lanes(1)
              + subs(out_f) * lanes(cls_f) + subs(out_f) * lanes(1)) * itemsize
    # x/out tiles (and, conservatively, the resident weights) double-buffered
    # by the pipeline; add the f32 hidden tile and slack for compiler temps.
    budget = 2 * (x_buf + o_buf + w_bufs) + 2 * h_tmp + (4 << 20)
    # Clamp: >=16 MiB so the compiler has room, <=48 MiB headroom guardrail
    # for v7x (64 MiB physical VMEM per TensorCore).
    return int(max(16 << 20, min(budget, 48 << 20)))


def classifier_forward(x, w1, b1, w2, b2, *, tile_n=None, compute_dtype=None):
    """Forward pass of `Classifier`.

    x : (N, in_features)
    w1: (cls_feats, in_features)   b1: (cls_feats,)      (PyTorch Linear layout)
    w2: (out_features, cls_feats)  b2: (out_features,)
    compute_dtype: optional (e.g. jnp.bfloat16) cast of x/W1/W2 at the call
        boundary -- halves x's HBM traffic and uses the bf16 MXU path; biases
        and accumulation stay f32.
    returns (N, out_features) = relu(x @ w1.T + b1) @ w2.T + b2
    """
    if compute_dtype is not None:
        x = x.astype(compute_dtype)
        w1 = w1.astype(compute_dtype)
        w2 = w2.astype(compute_dtype)

    n, in_f = x.shape
    cls_f, _ = w1.shape
    out_f, _ = w2.shape

    tile_n = _select_tile_n(n, tile_n)
    grid = (pl.cdiv(n, tile_n),)

    # Biases as (d, 1) columns so they broadcast over the lane (batch) axis.
    b1c = b1.reshape(cls_f, 1)
    b2c = b2.reshape(out_f, 1)

    itemsize = jnp.dtype(x.dtype).itemsize
    vmem_limit = _vmem_budget_bytes(in_f, cls_f, out_f, tile_n, itemsize)

    cost = pl.CostEstimate(
        flops=2 * n * (in_f * cls_f + cls_f * out_f),
        transcendentals=0,
        bytes_accessed=itemsize * (n * in_f + n * out_f
                                   + cls_f * in_f + out_f * cls_f)
        + 4 * (cls_f + out_f),
    )

    out_t = pl.pallas_call(
        _mlp_kernel,
        out_shape=jax.ShapeDtypeStruct((out_f, n), x.dtype),
        grid_spec=pltpu.PrefetchScalarGridSpec(
            num_scalar_prefetch=0,
            grid=grid,
            in_specs=[
                # x read natively: a tile of rows is contiguous in HBM.
                pl.BlockSpec((tile_n, in_f), lambda i: (i, 0)),
                # Weights/biases keep a constant block index, so Pallas skips
                # re-DMA across grid steps (resident in VMEM).
                # TODO(synk): pipeline_mode=pl.Buffered(1) would drop their second
                # buffer (~tens of KiB); skipped as it is negligible here.
                pl.BlockSpec((cls_f, in_f), lambda i: (0, 0)),    # W1
                pl.BlockSpec((cls_f, 1), lambda i: (0, 0)),       # b1
                pl.BlockSpec((out_f, cls_f), lambda i: (0, 0)),   # W2
                pl.BlockSpec((out_f, 1), lambda i: (0, 0)),       # b2
            ],
            out_specs=pl.BlockSpec((out_f, tile_n), lambda i: (0, i)),  # y^T tile
        ),
        compiler_params=pltpu.CompilerParams(
            dimension_semantics=("parallel",),   # batch tiles independent -> megacore
            vmem_limit_bytes=vmem_limit,
        ),
        cost_estimate=cost,
    )(x, w1, b1c, w2, b2c)

    return out_t.T                               # tiny (out_f, N) -> (N, out_f)


def _reference(x, w1, b1, w2, b2):
    return jnp.maximum(x @ w1.T + b1, 0.0) @ w2.T + b2


if __name__ == "__main__":
    # Shapes implied by the module: x is (batch, in_features).
    in_features = 32       # num_feats
    cls_feats = 64         # args.gcn_parameters['cls_feats']
    out_features = 2

    key = jax.random.PRNGKey(0)
    kx, k1, k2, k3, k4 = jax.random.split(key, 5)

    # PyTorch Linear stores W as (out, in); kernel consumes that layout directly.
    w1 = jax.random.normal(k1, (cls_feats, in_features), jnp.float32) * 0.1
    b1 = jax.random.normal(k2, (cls_feats,), jnp.float32) * 0.1
    w2 = jax.random.normal(k3, (out_features, cls_feats), jnp.float32) * 0.1
    b2 = jax.random.normal(k4, (out_features,), jnp.float32) * 0.1

    # --- Check 1: typical batch, auto tiling (single grid step). -------------
    x = jax.random.normal(kx, (512, in_features), dtype=jnp.float32)
    out = jax.block_until_ready(classifier_forward(x, w1, b1, w2, b2))
    ref = _reference(x, w1, b1, w2, b2)
    assert out.shape == (512, out_features)
    assert jnp.allclose(out, ref, atol=1e-4, rtol=1e-4), float(
        jnp.max(jnp.abs(out - ref)))

    # --- Check 2: batch not a multiple of the tile -> multi-step grid with a
    # partial trailing block (exercises Pallas' OOB write masking). ----------
    x2 = jax.random.normal(kx, (300, in_features), dtype=jnp.float32)
    out2 = jax.block_until_ready(
        classifier_forward(x2, w1, b1, w2, b2, tile_n=128))
    ref2 = _reference(x2, w1, b1, w2, b2)
    assert out2.shape == (300, out_features)
    assert jnp.allclose(out2, ref2, atol=1e-4, rtol=1e-4), float(
        jnp.max(jnp.abs(out2 - ref2)))

    # --- Check 3: optional bf16 compute path (loose tolerance). -------------
    out3 = jax.block_until_ready(
        classifier_forward(x, w1, b1, w2, b2, compute_dtype=jnp.bfloat16))
    assert jnp.allclose(out3.astype(jnp.float32), ref, atol=3e-2, rtol=3e-2), float(
        jnp.max(jnp.abs(out3.astype(jnp.float32) - ref)))

    print("KERNEL_OK")
</pallas_src>

<mosaic_0001>
module attributes {stable_mosaic.version = 11 : i64} {
  func.func @_mlp_kernel(%arg0: i32, %arg1: memref<512x32xf32, #tpu.memory_space<vmem>>, %arg2: memref<64x32xf32, #tpu.memory_space<vmem>>, %arg3: memref<64x1xf32, #tpu.memory_space<vmem>>, %arg4: memref<2x64xf32, #tpu.memory_space<vmem>>, %arg5: memref<2x1xf32, #tpu.memory_space<vmem>>, %arg6: memref<2x512xf32, #tpu.memory_space<vmem>>) attributes {dimension_semantics = [#tpu.dimension_semantics<parallel>], iteration_bounds = array<i64: 1>, scalar_prefetch = 0 : i64, scratch_operands = 0 : i64, tpu.core_type = #tpu.core_type<tc>, window_params = [{transform_indices = @transform_0, window_bounds = array<i64: 512, 32>}, {pipeline_mode = #tpu.pipeline_mode<synchronous>, transform_indices = @transform_1, window_bounds = array<i64: 64, 32>}, {pipeline_mode = #tpu.pipeline_mode<synchronous>, transform_indices = @transform_2, window_bounds = array<i64: 64, 1>}, {pipeline_mode = #tpu.pipeline_mode<synchronous>, transform_indices = @transform_3, window_bounds = array<i64: 2, 64>}, {pipeline_mode = #tpu.pipeline_mode<synchronous>, transform_indices = @transform_4, window_bounds = array<i64: 2, 1>}, {transform_indices = @transform_5, window_bounds = array<i64: 2, 512>}]} {
    %c0 = arith.constant 0 : index
    %c0_0 = arith.constant 0 : index
    %0 = vector.load %arg2[%c0, %c0_0] : memref<64x32xf32, #tpu.memory_space<vmem>>, vector<64x32xf32>
    %c0_1 = arith.constant 0 : index
    %c0_2 = arith.constant 0 : index
    %1 = vector.load %arg1[%c0_1, %c0_2] : memref<512x32xf32, #tpu.memory_space<vmem>>, vector<512x32xf32>
    %cst = arith.constant dense<0.000000e+00> : vector<64x512xf32>
    %2 = tpu.matmul %0, %1, %cst {dimension_numbers = #tpu.dot_dimension_numbers<[1], [1], [0], [0], [0, 0, 1, 0], [], []>} : vector<64x32xf32>, vector<512x32xf32>, vector<64x512xf32> -> vector<64x512xf32>
    %c0_3 = arith.constant 0 : index
    %c0_4 = arith.constant 0 : index
    %3 = vector.load %arg3[%c0_3, %c0_4] : memref<64x1xf32, #tpu.memory_space<vmem>>, vector<64x1xf32>
    %4 = vector.broadcast %3 : vector<64x1xf32> to vector<64x512xf32>
    %5 = arith.addf %2, %4 : vector<64x512xf32>
    %cst_5 = arith.constant 0.000000e+00 : f32
    %6 = vector.broadcast %cst_5 : f32 to vector<64x512xf32>
    %7 = arith.maximumf %5, %6 : vector<64x512xf32>
    %c0_6 = arith.constant 0 : index
    %c0_7 = arith.constant 0 : index
    %8 = vector.load %arg4[%c0_6, %c0_7] : memref<2x64xf32, #tpu.memory_space<vmem>>, vector<2x64xf32>
    %cst_8 = arith.constant dense<0.000000e+00> : vector<2x512xf32>
    %9 = tpu.matmul %8, %7, %cst_8 {dimension_numbers = #tpu.dot_dimension_numbers<[1], [0], [0], [1], [0, 0, 1, 1], [], []>} : vector<2x64xf32>, vector<64x512xf32>, vector<2x512xf32> -> vector<2x512xf32>
    %c0_9 = arith.constant 0 : index
    %c0_10 = arith.constant 0 : index
    %10 = vector.load %arg5[%c0_9, %c0_10] : memref<2x1xf32, #tpu.memory_space<vmem>>, vector<2x1xf32>
    %11 = vector.broadcast %10 : vector<2x1xf32> to vector<2x512xf32>
    %12 = arith.addf %9, %11 : vector<2x512xf32>
    %c0_11 = arith.constant 0 : index
    %c0_12 = arith.constant 0 : index
    %13 = vector.load %arg6[%c0_11, %c0_12] : memref<2x512xf32, #tpu.memory_space<vmem>>, vector<2x512xf32>
    tpu.vector_store %arg6[%c0_11, %c0_12], %12 {strides = array<i32>} : memref<2x512xf32, #tpu.memory_space<vmem>>, vector<2x512xf32>,
    return
  }
  func.func @transform_0(%arg0: i32) -> (i32, i32) {
    %c0_i32 = arith.constant 0 : i32
    %c0_i32_0 = arith.constant 0 : i32
    return %arg0, %c0_i32 : i32, i32
  }
  func.func @transform_1(%arg0: i32) -> (i32, i32) {
    %c0_i32 = arith.constant 0 : i32
    %c0_i32_0 = arith.constant 0 : i32
    %c0_i32_1 = arith.constant 0 : i32
    return %c0_i32, %c0_i32_0 : i32, i32
  }
  func.func @transform_2(%arg0: i32) -> (i32, i32) {
    %c0_i32 = arith.constant 0 : i32
    %c0_i32_0 = arith.constant 0 : i32
    %c0_i32_1 = arith.constant 0 : i32
    return %c0_i32, %c0_i32_0 : i32, i32
  }
  func.func @transform_3(%arg0: i32) -> (i32, i32) {
    %c0_i32 = arith.constant 0 : i32
    %c0_i32_0 = arith.constant 0 : i32
    %c0_i32_1 = arith.constant 0 : i32
    return %c0_i32, %c0_i32_0 : i32, i32
  }
  func.func @transform_4(%arg0: i32) -> (i32, i32) {
    %c0_i32 = arith.constant 0 : i32
    %c0_i32_0 = arith.constant 0 : i32
    %c0_i32_1 = arith.constant 0 : i32
    return %c0_i32, %c0_i32_0 : i32, i32
  }
  func.func @transform_5(%arg0: i32) -> (i32, i32) {
    %c0_i32 = arith.constant 0 : i32
    %c0_i32_0 = arith.constant 0 : i32
    return %c0_i32, %arg0 : i32, i32
  }
}

</mosaic_0001>

<bundles_post_ra>
// kernel: tpu_custom_call.1
= control target key start
LH: loop header
LB: loop body
LE: loop exit
PB: predicated region body
PF: predicated region fallthrough
CT: control target
= control target key end

     0   :  { %vm141_vm0 = vcmask 261120   ;;  %v1142_v7 = vmov 0   ;;  %s1542_s0 = inlined_call_operand.vmem [shape: f32[512,32], index: 0, kind: input, shape index: {}]   ;;  %s1543_s1 = inlined_call_operand.vmem [shape: f32[64,32], index: 1, kind: input, shape index: {}]   ;;  %s1544_s2 = inlined_call_operand.vmem [shape: f32[64,1], index: 2, kind: input, shape index: {}]   ;;  %s1545_s3 = inlined_call_operand.vmem [shape: f32[2,64], index: 3, kind: input, shape index: {}]   ;;  %s1546_s4 = inlined_call_operand.vmem [shape: f32[2,1], index: 4, kind: input, shape index: {}]   ;;  %s1547_s5 = inlined_call_operand.hbm [shape: f32[2,512], index: 5, kind: output, shape index: {}]  }
   0x1   :  { %v45_v0 = vld [vmem:[%s1542_s0 + $0x80] sm:$0xff]  ;;  %v46_v1 = vld [vmem:[%s1542_s0 + $0x88] sm:$0xff]  ;;  %vm1187_vm1 = vmpackc.low %vm141_vm0, %vm141_vm0  ;;  %1116 = vset.pattern.permute.xlu0 %v1142_v7  ;;  %1117 = vset.pattern.permute.xlu1 %v1142_v7 }
   0x2   :  { %v77_v2 = vld [vmem:[%s1542_s0 + $0x180] sm:$0xff]  ;;  %v984_v3 = vpack.c.bf16 %v46_v1, %v45_v0  ;;  %v78_v5 = vld [vmem:[%s1542_s0 + $0x188] sm:$0xff]  ;;  %v47_v14 = vld [vmem:[%s1542_s0 + $0x90] sm:$0xff] }
   0x3   :  { %v29_v6 = vld [vmem:[%s1542_s0] sm:$0xff]  ;;  %v1032_v8 = vpack.c.bf16 %v78_v5, %v77_v2  ;;  %v30_v9 = vld [vmem:[%s1542_s0 + $0x8] sm:$0xff]  ;;  %v48_v15 = vld [vmem:[%s1542_s0 + $0x98] sm:$0xff] }
   0x4   :  { %v61_v10 = vld [vmem:[%s1542_s0 + $0x100] sm:$0xff]  ;;  %v62_v11 = vld [vmem:[%s1542_s0 + $0x108] sm:$0xff]  ;;  %986 = vmatprep.subr.msk.bf16.mxu0 %vm1187_vm1, %v984_v3  ;;  %v987_v12 = vpack.c.bf16 %v30_v9, %v29_v6  ;;  %v79_v16 = vld [vmem:[%s1542_s0 + $0x190] sm:$0xff]  ;;  %v990_v17 = vpack.c.bf16 %v48_v15, %v47_v14 }
   0x5   :  { %v1035_v13 = vpack.c.bf16 %v62_v11, %v61_v10  ;;  %1034 = vmatprep.subr.msk.bf16.mxu1 %vm1187_vm1, %v1032_v8  ;;  %v80_v18 = vld [vmem:[%s1542_s0 + $0x198] sm:$0xff]  ;;  %v31_v20 = vld [vmem:[%s1542_s0 + $0x10] sm:$0xff]  ;;  %v49_v24 = vld [vmem:[%s1542_s0 + $0xa0] sm:$0xff] }
   0x6   :  { %989 = vmatpush3.bf16.xpose.msk.msra.mxu0 %vm1187_vm1, %v987_v12  ;;  %v1038_v19 = vpack.c.bf16 %v80_v18, %v79_v16  ;;  %v32_v21 = vld [vmem:[%s1542_s0 + $0x18] sm:$0xff]  ;;  %v63_v22 = vld [vmem:[%s1542_s0 + $0x110] sm:$0xff]  ;;  %v50_v25 = vld [vmem:[%s1542_s0 + $0xa8] sm:$0xff] }
   0x7   :  { %1037 = vmatpush3.bf16.xpose.msk.msra.mxu1 %vm1187_vm1, %v1035_v13  ;;  %992 = vmatprep.subr.msk.bf16.mxu0 %vm1187_vm1, %v990_v17  ;;  %v64_v23 = vld [vmem:[%s1542_s0 + $0x118] sm:$0xff]  ;;  %v81_v26 = vld [vmem:[%s1542_s0 + $0x1a0] sm:$0xff]  ;;  %v82_v27 = vld [vmem:[%s1542_s0 + $0x1a8] sm:$0xff]  ;;  %v993_v28 = vpack.c.bf16 %v32_v21, %v31_v20  ;;  %v996_v30 = vpack.c.bf16 %v50_v25, %v49_v24 }
   0x8   :  { %1040 = vmatprep.subr.msk.bf16.mxu1 %vm1187_vm1, %v1038_v19  ;;  %v1041_v29 = vpack.c.bf16 %v64_v23, %v63_v22  ;;  %v1044_v31 = vpack.c.bf16 %v82_v27, %v81_v26  ;;  %v33_v32 = vld [vmem:[%s1542_s0 + $0x20] sm:$0xff]  ;;  %v34_v33 = vld [vmem:[%s1542_s0 + $0x28] sm:$0xff]  ;;  %v51_v36 = vld [vmem:[%s1542_s0 + $0xb0] sm:$0xff] }
   0x9   :  { %v65_v34 = vld [vmem:[%s1542_s0 + $0x120] sm:$0xff]  ;;  %v66_v35 = vld [vmem:[%s1542_s0 + $0x128] sm:$0xff]  ;;  %v52_v37 = vld [vmem:[%s1542_s0 + $0xb8] sm:$0xff]  ;;  %v999_v40 = vpack.c.bf16 %v34_v33, %v33_v32 }
   0xa   :  { %v83_v38 = vld [vmem:[%s1542_s0 + $0x1b0] sm:$0xff]  ;;  %v84_v39 = vld [vmem:[%s1542_s0 + $0x1b8] sm:$0xff]  ;;  %v1047_v41 = vpack.c.bf16 %v66_v35, %v65_v34  ;;  %v1002_v42 = vpack.c.bf16 %v52_v37, %v51_v36  ;;  %v1299_v46 = vld [vmem:[%s1543_s1] sm:$0xff] }
   0xb   :  { %v1050_v43 = vpack.c.bf16 %v84_v39, %v83_v38  ;;  %v35_v44 = vld [vmem:[%s1542_s0 + $0x30] sm:$0xff]  ;;  %v36_v45 = vld [vmem:[%s1542_s0 + $0x38] sm:$0xff]  ;;  %v53_v49 = vld [vmem:[%s1542_s0 + $0xc0] sm:$0xff]  ;;  %920 = vmatprep.mubr.msk.f32.mxu0 %vm141_vm0, %v1299_v46  ;;  %968 = vmatprep.mubr.msk.f32.mxu1 %vm141_vm0, %v1299_v46 }
   0xc   :  { %v67_v47 = vld [vmem:[%s1542_s0 + $0x130] sm:$0xff]  ;;  %v68_v48 = vld [vmem:[%s1542_s0 + $0x138] sm:$0xff]  ;;  %v54_v50 = vld [vmem:[%s1542_s0 + $0xc8] sm:$0xff]  ;;  %v1005_v54 = vpack.c.bf16 %v36_v45, %v35_v44 }
   0xd   :  { %v85_v51 = vld [vmem:[%s1542_s0 + $0x1c0] sm:$0xff]  ;;  %v86_v52 = vld [vmem:[%s1542_s0 + $0x1c8] sm:$0xff]  ;;  %v1053_v55 = vpack.c.bf16 %v68_v48, %v67_v47  ;;  %v95_v56 = vld [vmem:[%s1544_s2 + $0x10] sm:$0xff]  ;;  %v1008_v57 = vpack.c.bf16 %v54_v50, %v53_v49 }
   0xe   :  { %995 = vmatpush3.bf16.xpose.msk.msra.mxu0 %vm1187_vm1, %v993_v28  ;;  %v93_v53 = vld [vmem:[%s1544_s2] sm:$0xff]  ;;  %v1056_v58 = vpack.c.bf16 %v86_v52, %v85_v51  ;;  %113 = vperm.xlu1 %1117, %v95_v56  }
   0xf   :  { %1043 = vmatpush3.bf16.xpose.msk.msra.mxu1 %vm1187_vm1, %v1041_v29  ;;  %998 = vmatprep.subr.msk.bf16.mxu0 %vm1187_vm1, %v996_v30 }
  0x10   :  { %1046 = vmatprep.subr.msk.bf16.mxu1 %vm1187_vm1, %v1044_v31  ;;  %103 = vperm.xlu0 %1116, %v93_v53  }
  0x16   :  { %1001 = vmatpush3.bf16.xpose.msk.msra.mxu0 %vm1187_vm1, %v999_v40 }
  0x17   :  { %1049 = vmatpush3.bf16.xpose.msk.msra.mxu1 %vm1187_vm1, %v1047_v41  ;;  %1004 = vmatprep.subr.msk.bf16.mxu0 %vm1187_vm1, %v1002_v42 }
  0x18   :  { %1052 = vmatprep.subr.msk.bf16.mxu1 %vm1187_vm1, %v1050_v43 }
  0x19   :  { %10 = vsyncpa [#allocation3], 0  ;;  %v94_v59 = vld [vmem:[%s1544_s2 + $0x8] sm:$0xff]  ;;  %v96_v60 = vld [vmem:[%s1544_s2 + $0x18] sm:$0xff]  ;;  %v1143_v51 = vmov 0.0   ;;  %vm623_vm2 = vcmask 523264  }
  0x1a   :  { %v37_v61 = vld [vmem:[%s1542_s0 + $0x40] sm:$0xff]  ;;  %v38_v62 = vld [vmem:[%s1542_s0 + $0x48] sm:$0xff]  ;;  %v55_v1 = vld [vmem:[%s1542_s0 + $0xd0] sm:$0xff]  ;;  %108 = vperm.xlu0 %1116, %v94_v59   ;;  %118 = vperm.xlu1 %1117, %v96_v60  }
  0x1b   :  { %v69_v63 = vld [vmem:[%s1542_s0 + $0x140] sm:$0xff]  ;;  %v70_v0 = vld [vmem:[%s1542_s0 + $0x148] sm:$0xff]  ;;  %v56_v2 = vld [vmem:[%s1542_s0 + $0xd8] sm:$0xff]  ;;  %v1011_v8 = vpack.c.bf16 %v38_v62, %v37_v61 }
  0x1c   :  { %v87_v3 = vld [vmem:[%s1542_s0 + $0x1d0] sm:$0xff]  ;;  %v88_v5 = vld [vmem:[%s1542_s0 + $0x1d8] sm:$0xff]  ;;  %v97_v6 = vld [vmem:[%s1544_s2 + $0x20] sm:$0xff]  ;;  %v1059_v9 = vpack.c.bf16 %v70_v0, %v69_v63  ;;  %v1014_v10 = vpack.c.bf16 %v56_v2, %v55_v1 }
  0x1d   :  { %v98_v7 = vld [vmem:[%s1544_s2 + $0x28] sm:$0xff]  ;;  %v1062_v11 = vpack.c.bf16 %v88_v5, %v87_v3  ;;  %v99_v12 = vld [vmem:[%s1544_s2 + $0x30] sm:$0xff]  ;;  %v100_v13 = vld [vmem:[%s1544_s2 + $0x38] sm:$0xff] }
  0x1e   :  { %1007 = vmatpush3.bf16.xpose.msk.msra.mxu0 %vm1187_vm1, %v1005_v54  ;;  %123 = vperm.xlu0 %1116, %v97_v6   ;;  %v39_v14 = vld [vmem:[%s1542_s0 + $0x50] sm:$0xff]  ;;  %v40_v15 = vld [vmem:[%s1542_s0 + $0x58] sm:$0xff]  ;;  %v57_v18 = vld [vmem:[%s1542_s0 + $0xe0] sm:$0xff] }
  0x1f   :  { %1055 = vmatpush3.bf16.xpose.msk.msra.mxu1 %vm1187_vm1, %v1053_v55  ;;  %1010 = vmatprep.subr.msk.bf16.mxu0 %vm1187_vm1, %v1008_v57  ;;  %v71_v16 = vld [vmem:[%s1542_s0 + $0x150] sm:$0xff]  ;;  %v72_v17 = vld [vmem:[%s1542_s0 + $0x158] sm:$0xff]  ;;  %v58_v19 = vld [vmem:[%s1542_s0 + $0xe8] sm:$0xff]  ;;  %v1017_v23 = vpack.c.bf16 %v40_v15, %v39_v14 }
  0x20   :  { %1058 = vmatprep.subr.msk.bf16.mxu1 %vm1187_vm1, %v1056_v58  ;;  %128 = vperm.xlu1 %1117, %v98_v7   ;;  %v89_v20 = vld [vmem:[%s1542_s0 + $0x1e0] sm:$0xff]  ;;  %v90_v21 = vld [vmem:[%s1542_s0 + $0x1e8] sm:$0xff]  ;;  %v1065_v24 = vpack.c.bf16 %v72_v17, %v71_v16  ;;  %v1020_v25 = vpack.c.bf16 %v58_v19, %v57_v18  ;;  %v59_v31 = vld [vmem:[%s1542_s0 + $0xf0] sm:$0xff] }
  0x21   :  { %v617_v22 = vld [vmem:[%s1546_s4] sm:$0x3]  ;;  %v1068_v26 = vpack.c.bf16 %v90_v21, %v89_v20  ;;  %v42_v28 = vld [vmem:[%s1542_s0 + $0x68] sm:$0xff]  ;;  %v60_v32 = vld [vmem:[%s1542_s0 + $0xf8] sm:$0xff] }
  0x22   :  { %133 = vperm.xlu0 %1116, %v99_v12   ;;  %v41_v27 = vld [vmem:[%s1542_s0 + $0x60] sm:$0xff]  ;;  %v74_v30 = vld [vmem:[%s1542_s0 + $0x168] sm:$0xff]  ;;  %v91_v33 = vld [vmem:[%s1542_s0 + $0x1f0] sm:$0xff]  ;;  %v1026_v37 = vpack.c.bf16 %v60_v32, %v59_v31 }
  0x23   :  { %v73_v29 = vld [vmem:[%s1542_s0 + $0x160] sm:$0xff]  ;;  %v92_v34 = vld [vmem:[%s1542_s0 + $0x1f8] sm:$0xff]  ;;  %v1023_v35 = vpack.c.bf16 %v42_v28, %v41_v27  ;;  %v43_v39 = vld [vmem:[%s1542_s0 + $0x70] sm:$0xff] }
  0x24   :  { %138 = vperm.xlu1 %1117, %v100_v13   ;;  %v1071_v36 = vpack.c.bf16 %v74_v30, %v73_v29  ;;  %v1074_v38 = vpack.c.bf16 %v92_v34, %v91_v33  ;;  %v44_v40 = vld [vmem:[%s1542_s0 + $0x78] sm:$0xff]  ;;  %v75_v41 = vld [vmem:[%s1542_s0 + $0x170] sm:$0xff]  ;;  %v22_v45 = vld [vmem:[%s1543_s1 + $0x8] sm:$0xff] }
  0x25   :  { %v76_v42 = vld [vmem:[%s1542_s0 + $0x178] sm:$0xff]  ;;  %v1029_v43 = vpack.c.bf16 %v44_v40, %v43_v39  ;;  %v23_v47 = vld [vmem:[%s1543_s1 + $0x10] sm:$0xff]  ;;  %v26_v48 = vld [vmem:[%s1543_s1 + $0x28] sm:$0xff] }
  0x26   :  { %1013 = vmatpush3.bf16.xpose.msk.msra.mxu0 %vm1187_vm1, %v1011_v8  ;;  %620 = vperm.xlu0 %1116, %v617_v22   ;;  %v1077_v44 = vpack.c.bf16 %v76_v42, %v75_v41  ;;  %v24_v4 = vld [vmem:[%s1543_s1 + $0x18] sm:$0xff]  ;;  %v27_v49 = vld [vmem:[%s1543_s1 + $0x30] sm:$0xff] }
  0x27   :  { %1061 = vmatpush3.bf16.xpose.msk.msra.mxu1 %vm1187_vm1, %v1059_v9  ;;  %1016 = vmatprep.subr.msk.bf16.mxu0 %vm1187_vm1, %v1014_v10  ;;  %v28_v50 = vld [vmem:[%s1543_s1 + $0x38] sm:$0xff] }
  0x28   :  { %1064 = vmatprep.subr.msk.bf16.mxu1 %vm1187_vm1, %v1062_v11 }
  0x2e   :  { %1019 = vmatpush3.bf16.xpose.msk.msra.mxu0 %vm1187_vm1, %v1017_v23 }
  0x2f   :  { %1067 = vmatpush3.bf16.xpose.msk.msra.mxu1 %vm1187_vm1, %v1065_v24  ;;  %1022 = vmatprep.subr.msk.bf16.mxu0 %vm1187_vm1, %v1020_v25 }
  0x30   :  { %1070 = vmatprep.subr.msk.bf16.mxu1 %vm1187_vm1, %v1068_v26 }
  0x36   :  { %1025 = vmatpush3.bf16.xpose.msk.msra.mxu0 %vm1187_vm1, %v1023_v35 }
  0x37   :  { %1073 = vmatpush3.bf16.xpose.msk.msra.mxu1 %vm1187_vm1, %v1071_v36  ;;  %1028 = vmatprep.subr.msk.bf16.mxu0 %vm1187_vm1, %v1026_v37 }
  0x38   :  { %1076 = vmatprep.subr.msk.bf16.mxu1 %vm1187_vm1, %v1074_v38 }
  0x3e   :  { %1031 = vmatpush3.bf16.xpose.msk.msra.mxu0 %vm1187_vm1, %v1029_v43 }
  0x3f   :  { %1079 = vmatpush3.bf16.xpose.msk.msra.mxu1 %vm1187_vm1, %v1077_v44 }
  0x45   :  { %921 = vmatmul.mubr.msk.f32.vlgmr.msra.gmra.mrb[0].mxu0 %vm141_vm0, %v1299_v46 }
  0x46   :  { %969 = vmatmul.mubr.msk.f32.vlgmr.msra.gmra.mrb[0].mxu1 %vm141_vm0, %v1299_v46  ;;  %922 = vmatprep.mubr.msk.f32.mxu0 %vm141_vm0, %v22_v45  ;;  %v25_v46 = vld [vmem:[%s1543_s1 + $0x20] sm:$0xff] }
  0x47   :  { %970 = vmatprep.mubr.msk.f32.mxu1 %vm141_vm0, %v22_v45 }
  0x49   :  { %923 = vmatmul.mubr.msk.f32.gmra.mrb[2].mxu0 %vm141_vm0, %v22_v45 }
  0x4a   :  { %971 = vmatmul.mubr.msk.f32.gmra.mrb[2].mxu1 %vm141_vm0, %v22_v45  ;;  %924 = vmatprep.mubr.msk.f32.mxu0 %vm141_vm0, %v23_v47 }
  0x4b   :  { %972 = vmatprep.mubr.msk.f32.mxu1 %vm141_vm0, %v23_v47 }
  0x4d   :  { %925 = vmatmul.mubr.msk.f32.gmra.mrb[4].mxu0 %vm141_vm0, %v23_v47 }
  0x4e   :  { %973 = vmatmul.mubr.msk.f32.gmra.mrb[4].mxu1 %vm141_vm0, %v23_v47  ;;  %926 = vmatprep.mubr.msk.f32.mxu0 %vm141_vm0, %v24_v4 }
  0x4f   :  { %974 = vmatprep.mubr.msk.f32.mxu1 %vm141_vm0, %v24_v4 }
  0x51   :  { %927 = vmatmul.mubr.msk.f32.gmra.mrb[6].mxu0 %vm141_vm0, %v24_v4 }
  0x52   :  { %975 = vmatmul.mubr.msk.f32.gmra.mrb[6].mxu1 %vm141_vm0, %v24_v4  ;;  %928 = vmatprep.mubr.msk.f32.mxu0 %vm141_vm0, %v25_v46 }
  0x53   :  { %976 = vmatprep.mubr.msk.f32.mxu1 %vm141_vm0, %v25_v46 }
  0x55   :  { %929 = vmatmul.mubr.msk.f32.gmra.mrb[8].mxu0 %vm141_vm0, %v25_v46 }
  0x56   :  { %977 = vmatmul.mubr.msk.f32.gmra.mrb[8].mxu1 %vm141_vm0, %v25_v46  ;;  %930 = vmatprep.mubr.msk.f32.mxu0 %vm141_vm0, %v26_v48 }
  0x57   :  { %978 = vmatprep.mubr.msk.f32.mxu1 %vm141_vm0, %v26_v48 }
  0x59   :  { %931 = vmatmul.mubr.msk.f32.gmra.mrb[10].mxu0 %vm141_vm0, %v26_v48 }
  0x5a   :  { %979 = vmatmul.mubr.msk.f32.gmra.mrb[10].mxu1 %vm141_vm0, %v26_v48  ;;  %932 = vmatprep.mubr.msk.f32.mxu0 %vm141_vm0, %v27_v49 }
  0x5b   :  { %980 = vmatprep.mubr.msk.f32.mxu1 %vm141_vm0, %v27_v49 }
  0x5d   :  { %933 = vmatmul.mubr.msk.f32.gmra.mrb[12].mxu0 %vm141_vm0, %v27_v49 }
  0x5e   :  { %981 = vmatmul.mubr.msk.f32.gmra.mrb[12].mxu1 %vm141_vm0, %v27_v49  ;;  %934 = vmatprep.mubr.msk.f32.mxu0 %vm141_vm0, %v28_v50 }
  0x5f   :  { %982 = vmatprep.mubr.msk.f32.mxu1 %vm141_vm0, %v28_v50 }
  0x61   :  { %935 = vmatmul.mubr.msk.f32.gmra.mrb[14].mxu0 %vm141_vm0, %v28_v50 }
  0x62   :  { %983 = vmatmul.mubr.msk.f32.gmra.mrb[14].mxu1 %vm141_vm0, %v28_v50  ;;  %691 = vmatprep.mubr.f32.mxu0 %v1143_v51 }
  0x63   :  { %762 = vmatprep.mubr.f32.mxu1 %v1143_v51 }
  0x8d   :  { %v114_v58 = vpop.permute.xlu1 %113 }
  0x8f   :  { %v104_v52 = vpop.permute.xlu0 %103 }
  0x99   :  { %v109_v57 = vpop.permute.xlu0 %108  ;;  %v119_v24 = vpop.permute.xlu1 %118 }
  0x9d   :  { %v124_v50 = vpop.permute.xlu0 %123 }
 0x118   :  { %v424_v53 = vpop.f32.mrb[0].mxu0 }
 0x119   :  { %v537_v54 = vpop.f32.mrb[0].mxu1  ;;  %v426_v55 = vpop.f32.mrb[1].mxu0  ;;  %v425_v59 = vadd.f32 %v424_v53, %v104_v52 }
 0x11a   :  { %v539_v56 = vpop.f32.mrb[1].mxu1  ;;  %v538_v60 = vadd.f32 %v537_v54, %v104_v52  ;;  %v427_v61 = vadd.f32 %v426_v55, %v104_v52  ;;  %v129_v53 = vpop.permute.xlu1 %128 }
 0x11b   :  { %v540_v62 = vadd.f32 %v539_v56, %v104_v52  ;;  %v584_v8 = vmax.f32 %v425_v59, 0.0 }
 0x11c   :  { %v430_v63 = vpop.f32.mrb[2].mxu0  ;;  %v586_v9 = vmax.f32 %v538_v60, 0.0  ;;  %v585_v12 = vmax.f32 %v427_v61, 0.0 }
 0x11d   :  { %v543_v0 = vpop.f32.mrb[2].mxu1  ;;  %v431_v1 = vadd.f32 %v430_v63, %v109_v57  ;;  %v432_v3 = vpop.f32.mrb[3].mxu0  ;;  %v587_v13 = vmax.f32 %v540_v62, 0.0 }
 0x11e   :  { %v544_v2 = vadd.f32 %v543_v0, %v109_v57  ;;  %v545_v5 = vpop.f32.mrb[3].mxu1  ;;  %v433_v6 = vadd.f32 %v432_v3, %v109_v57 }
 0x11f   :  { %v546_v7 = vadd.f32 %v545_v5, %v109_v57  ;;  %v588_v10 = vmax.f32 %v431_v1, 0.0 }
 0x120   :  { %v590_v11 = vmax.f32 %v544_v2, 0.0  ;;  %v589_v14 = vmax.f32 %v433_v6, 0.0  ;;  %v436_v16 = vpop.f32.mrb[4].mxu0 }
 0x121   :  { %v591_v15 = vmax.f32 %v546_v7, 0.0  ;;  %v549_v17 = vpop.f32.mrb[4].mxu1  ;;  %v1082_v18 = vpack.c.bf16 %v588_v10, %v584_v8  ;;  %v438_v20 = vpop.f32.mrb[5].mxu0  ;;  %v437_v25 = vadd.f32 %v436_v16, %v114_v58 }
 0x122   :  { %v1098_v19 = vpack.c.bf16 %v590_v11, %v586_v9  ;;  %v551_v21 = vpop.f32.mrb[5].mxu1  ;;  %v1080_v22 = vpack.c.bf16 %v589_v14, %v585_v12  ;;  %v550_v26 = vadd.f32 %v549_v17, %v114_v58  ;;  %v439_v27 = vadd.f32 %v438_v20, %v114_v58  ;;  %v134_v17 = vpop.permute.xlu0 %133 }
 0x123   :  { %v1096_v23 = vpack.c.bf16 %v591_v15, %v587_v13  ;;  %v552_v28 = vadd.f32 %v551_v21, %v114_v58  ;;  %v592_v37 = vmax.f32 %v437_v25, 0.0  ;;  %v139_v20 = vpop.permute.xlu1 %138 }
 0x124   :  { %v442_v29 = vpop.f32.mrb[6].mxu0  ;;  %1081 = vmatprep.subr.bf16.mxu0 %v1080_v22  ;;  %v594_v38 = vmax.f32 %v550_v26, 0.0  ;;  %v593_v41 = vmax.f32 %v439_v27, 0.0 }
 0x125   :  { %v555_v30 = vpop.f32.mrb[6].mxu1  ;;  %1097 = vmatprep.subr.bf16.mxu1 %v1096_v23  ;;  %v443_v31 = vadd.f32 %v442_v29, %v119_v24  ;;  %v444_v33 = vpop.f32.mrb[7].mxu0  ;;  %1083 = vmatpush1.bf16.msra.mxu0 %v1082_v18  ;;  %v595_v42 = vmax.f32 %v552_v28, 0.0 }
 0x126   :  { %v556_v32 = vadd.f32 %v555_v30, %v119_v24  ;;  %v557_v34 = vpop.f32.mrb[7].mxu1  ;;  %1099 = vmatpush1.bf16.msra.mxu1 %v1098_v19  ;;  %v445_v35 = vadd.f32 %v444_v33, %v119_v24 }
 0x127   :  { %v558_v36 = vadd.f32 %v557_v34, %v119_v24  ;;  %v596_v39 = vmax.f32 %v443_v31, 0.0 }
 0x128   :  { %v598_v40 = vmax.f32 %v556_v32, 0.0  ;;  %v597_v43 = vmax.f32 %v445_v35, 0.0  ;;  %v448_v45 = vpop.f32.mrb[8].mxu0 }
 0x129   :  { %v599_v44 = vmax.f32 %v558_v36, 0.0  ;;  %v561_v47 = vpop.f32.mrb[8].mxu1  ;;  %v1086_v4 = vpack.c.bf16 %v596_v39, %v592_v37  ;;  %v450_v48 = vpop.f32.mrb[9].mxu0  ;;  %v449_v54 = vadd.f32 %v448_v45, %v124_v50  ;;  %v616_v45 = vld [vmem:[%s1545_s3] sm:$0x3]  ;;  %s1145_s3 = smov [#allocation2]  }
 0x12a   :  { %v1102_v46 = vpack.c.bf16 %v598_v40, %v594_v38  ;;  %v563_v49 = vpop.f32.mrb[9].mxu1  ;;  %v1084_v51 = vpack.c.bf16 %v597_v43, %v593_v41  ;;  %v562_v55 = vadd.f32 %v561_v47, %v124_v50  ;;  %v451_v56 = vadd.f32 %v450_v48, %v124_v50  ;;  %s798_s26 = sshll.u32 %s1145_s3, 4  ;;  %s799_s26 = int_to_ptr.vmem [resolvable:$true] %s798_s26 }
 0x12b   :  { %v1100_v52 = vpack.c.bf16 %v599_v44, %v595_v42  ;;  %v564_v57 = vadd.f32 %v563_v49, %v124_v50  ;;  %v600_v2 = vmax.f32 %v449_v54, 0.0  ;;  %v1144_v47 = vmov 1983009808   ;;  %v621_v50 = vpop.permute.xlu0 %620  ;;  %s1118_s27 = scalar_lea.vmem %s799_s26, 128  ;;  %p1123_p1 = scmp.lt.s32.totalorder %s799_s26, %s799_s26 }
 0x12c   :  { %v454_v58 = vpop.f32.mrb[10].mxu0  ;;  %1085 = vmatprep.subr.bf16.mxu0 %v1084_v51  ;;  %v602_v3 = vmax.f32 %v562_v55, 0.0  ;;  %v601_v7 = vmax.f32 %v451_v56, 0.0  ;;  %p1119_p0 = scmp.ne.s32.totalorder %s799_s26, %s1118_s27  ;;  %p1124_p2 = scmp.lt.s32.totalorder %s1118_s27, %s1118_s27 }
 0x12d   :  { %v567_v59 = vpop.f32.mrb[10].mxu1  ;;  %1101 = vmatprep.subr.bf16.mxu1 %v1100_v52  ;;  %v455_v60 = vadd.f32 %v454_v58, %v129_v53  ;;  %v456_v62 = vpop.f32.mrb[11].mxu0  ;;  %1087 = vmatpush1.bf16.msra.mxu0 %v1086_v4  ;;  %v603_v8 = vmax.f32 %v564_v57, 0.0  ;;  %v776_v4 = vunpack.c.l.s4 %v1144_v47 }
 0x12e   :  { %v568_v61 = vadd.f32 %v567_v59, %v129_v53  ;;  %v569_v63 = vpop.f32.mrb[11].mxu1  ;;  %1103 = vmatpush1.bf16.msra.mxu1 %v1102_v46  ;;  %v457_v0 = vadd.f32 %v456_v62, %v129_v53  ;;  %v778_v46 = vlaneseq  ;;  %p1125_p3 = por %p1124_p2, %p1123_p1 }
 0x12f   :  { %v570_v1 = vadd.f32 %v569_v63, %v129_v53  ;;  %v604_v5 = vmax.f32 %v455_v60, 0.0  ;;  %v777_v48 = vunpack.c.0.s8 %v776_v4 }
 0x130   :  { %v606_v6 = vmax.f32 %v568_v61, 0.0  ;;  %v605_v9 = vmax.f32 %v457_v0, 0.0  ;;  %v460_v11 = vpop.f32.mrb[12].mxu0  ;;  %v779_v49 = vshrl.u32 %v778_v46, 7  ;;  %p1126_p4 = pnand %p1125_p3, %p1119_p0 }
 0x131   :  { %v607_v10 = vmax.f32 %v570_v1, 0.0  ;;  %v573_v12 = vpop.f32.mrb[12].mxu1  ;;  %v1090_v13 = vpack.c.bf16 %v604_v5, %v600_v2  ;;  %v462_v15 = vpop.f32.mrb[13].mxu0  ;;  %v461_v21 = vadd.f32 %v460_v11, %v134_v17 }
 0x132   :  { %v1106_v14 = vpack.c.bf16 %v606_v6, %v602_v3  ;;  %v575_v16 = vpop.f32.mrb[13].mxu1  ;;  %v1088_v18 = vpack.c.bf16 %v605_v9, %v601_v7  ;;  %v574_v22 = vadd.f32 %v573_v12, %v134_v17  ;;  %v463_v23 = vadd.f32 %v462_v15, %v134_v17 }
 0x133   :  { %v1104_v19 = vpack.c.bf16 %v607_v10, %v603_v8  ;;  %v576_v24 = vadd.f32 %v575_v16, %v134_v17  ;;  %v608_v33 = vmax.f32 %v461_v21, 0.0  ;;  %v780_v59 = vsub.s32 %v777_v48, %v779_v49 }
 0x134   :  { %v466_v25 = vpop.f32.mrb[14].mxu0  ;;  %1089 = vmatprep.subr.bf16.mxu0 %v1088_v18  ;;  %v610_v34 = vmax.f32 %v574_v22, 0.0  ;;  %v609_v37 = vmax.f32 %v463_v23, 0.0 }
 0x135   :  { %v579_v26 = vpop.f32.mrb[14].mxu1  ;;  %1105 = vmatprep.subr.bf16.mxu1 %v1104_v19  ;;  %v467_v27 = vadd.f32 %v466_v25, %v139_v20  ;;  %v468_v29 = vpop.f32.mrb[15].mxu0  ;;  %1091 = vmatpush1.bf16.msra.mxu0 %v1090_v13  ;;  %v611_v38 = vmax.f32 %v576_v24, 0.0 }
 0x136   :  { %v580_v28 = vadd.f32 %v579_v26, %v139_v20  ;;  %v581_v30 = vpop.f32.mrb[15].mxu1  ;;  %1107 = vmatpush1.bf16.msra.mxu1 %v1106_v14  ;;  %v469_v31 = vadd.f32 %v468_v29, %v139_v20 }
 0x137   :  { %v582_v32 = vadd.f32 %v581_v30, %v139_v20  ;;  %v612_v35 = vmax.f32 %v467_v27, 0.0 }
 0x138   :  { %v614_v36 = vmax.f32 %v580_v28, 0.0  ;;  %v613_v39 = vmax.f32 %v469_v31, 0.0 }
 0x139   :  { %v615_v40 = vmax.f32 %v582_v32, 0.0  ;;  %v1094_v41 = vpack.c.bf16 %v612_v35, %v608_v33 }
 0x13a   :  { %v1110_v42 = vpack.c.bf16 %v614_v36, %v610_v34  ;;  %v1092_v43 = vpack.c.bf16 %v613_v39, %v609_v37 }
 0x13b   :  { %v1108_v44 = vpack.c.bf16 %v615_v40, %v611_v38 }
 0x13c   :  { %1093 = vmatprep.subr.bf16.mxu0 %v1092_v43 }
 0x13d   :  { %1109 = vmatprep.subr.bf16.mxu1 %v1108_v44  ;;  %1095 = vmatpush1.bf16.msra.mxu0 %v1094_v41 }
 0x13e   :  { %1111 = vmatpush1.bf16.msra.mxu1 %v1110_v42 }
 0x140   :  { %886 = vmatmul.mubr.msk.f32.vlgmr.msra.gmra.mrb[16].mxu0 %vm623_vm2, %v616_v45 }
 0x141   :  { %887 = vmatmul.mubr.msk.f32.vlgmr.msra.gmra.mrb[16].mxu1 %vm623_vm2, %v616_v45 }
 0x213   :  { %v693_v51 = vpop.f32.mrb[16].mxu0 }
 0x214   :  { %v764_v52 = vpop.f32.mrb[16].mxu1  ;;  %v694_v53 = vadd.f32 %v693_v51, %v621_v50  ;;  %v695_v55 = vpop.f32.mrb[17].mxu0 }
 0x215   :  { %v765_v54 = vadd.f32 %v764_v52, %v621_v50  ;;  %v766_v56 = vpop.f32.mrb[17].mxu1  ;;  %v696_v57 = vadd.f32 %v695_v55, %v621_v50 }
 0x216   :  { %v767_v58 = vadd.f32 %v766_v56, %v621_v50 }
 0x217   :  { %v773_v60 = vcombine.low %v694_v53, %v696_v57 }
 0x218   :  { %v774_v61 = vcombine.low %v765_v54, %v767_v58 }
 0x219   :  { %v781_v62 = vrot.slane %v773_v60, %v780_v59 }
 0x21a   :  { %v788_v63 = vrot.slane %v774_v61, %v780_v59 }
 0x21c   :  { %v789_v0 = vcombine.low %v781_v62, %v788_v63 }
 0x21e   :  { %791 = vst [vmem:[#allocation2] sm:$0xff] %v789_v0 }
 0x21f   :  { %1129 = shalt.err (!%p1126_p4)
}
 0x220   :  { %s1130_s29 = scalar_lea.hbm %s1547_s5, 128 }
 0x221   :  { %p1131_p5 = scmp.ne.s32.totalorder %s1547_s5, %s1130_s29  ;;  %p1134_p6 = scmp.lt.u32.totalorder %s1130_s29, %s1547_s5 }
 0x223   :  { %p1136_p7 = pnand %p1134_p6, %p1131_p5 }
 0x225   :  { %1139 = shalt.err (!%p1136_p7)
}
 0x226   :  { %801 = dma.vmem_to_hbm [thread:$0]  %s799_s26, 128, %s1547_s5, [#allocation3]  }
 0x227   :  { %1140 = dma.done.wait [#allocation3], 128  }
 0x228   :  { %1141 = vsyncadd [#allocation3], 4294967168 }
 0x229   :  { %805 = vsyncpa [#allocation3], 1 }

</bundles_post_ra>
